<compile_context>
chip_gen: v6e
topology: v6e:2x2x1
jax: 0.10.0
libtpu: 0.0.40
codegen_flags: <defaults>
</compile_context>

<pallas_src>
import functools

import jax
import jax.numpy as jnp
from jax.experimental import pallas as pl
from jax.experimental.pallas import tpu as pltpu

LANES = 128
SUBLANES = 8
TARGET_BLOCK_BYTES = 4 * 1024 * 1024    # ~4 MiB per input block (native dtype)
VMEM_LIMIT_BYTES = 40 * 1024 * 1024     # explicit scoped-VMEM budget (all gens)


def _num_tensorcores():
    # 2 TensorCores per chip only on v7x-class parts; v5e/v6e have 1.
    try:
        kind = jax.devices()[0].device_kind.lower()
        if "v7" in kind:
            return 2
    except Exception:
        pass
    return 1


def _dice_kernel(x_ref, t_ref, inter_ref, sum_ref, *,
                 tile_rows, blocks_per_core, num_blocks, total_rows, has_tail):
    c = pl.program_id(0)   # "parallel" core axis
    i = pl.program_id(1)   # "arbitrary" reduction axis

    @pl.when(i == 0)
    def _():
        inter_ref[...] = jnp.zeros_like(inter_ref)
        sum_ref[...] = jnp.zeros_like(sum_ref)

    n8 = tile_rows // SUBLANES

    def accumulate(x, t):
        # (tile_rows, 128) -> (n8, 8, 128); sum over axis 0 is pure vreg-wise
        # VALU adds (no cross-lane work). Accumulate (8, 128) partials.
        xr = x.reshape(n8, SUBLANES, LANES)
        tr = t.reshape(n8, SUBLANES, LANES)
        inter_ref[...] += jnp.sum(xr * tr, axis=0)
        sum_ref[...] += jnp.sum(xr + tr, axis=0)

    if has_tail:
        # Only the single globally-last block is partial; gate the masked
        # (iota + select) path so every other block takes the fast path.
        is_tail = (c * blocks_per_core + i) == (num_blocks - 1)

        @pl.when(jnp.logical_not(is_tail))
        def _():
            accumulate(x_ref[...].astype(jnp.float32),
                       t_ref[...].astype(jnp.float32))

        @pl.when(is_tail)
        def _():
            row0 = (num_blocks - 1) * tile_rows
            row_ids = row0 + jax.lax.broadcasted_iota(
                jnp.int32, (tile_rows, LANES), 0)
            valid = row_ids < total_rows
            x = jnp.where(valid, x_ref[...].astype(jnp.float32), 0.0)
            t = jnp.where(valid, t_ref[...].astype(jnp.float32), 0.0)
            accumulate(x, t)
    else:
        accumulate(x_ref[...].astype(jnp.float32),
                   t_ref[...].astype(jnp.float32))


def dice_loss(inputs, targets, smooth=1.0):
    """Pallas implementation of DiceLoss.forward. Returns a float32 scalar."""
    assert inputs.shape == targets.shape, "inputs/targets must match in shape"

    x = jnp.reshape(inputs, (-1,))
    t = jnp.reshape(targets, (-1,))
    n = x.shape[0]

    # Pad (minimally) up to a multiple of 8*128 so rows is sublane-aligned;
    # zero padding is sum-neutral.
    tile_elems = SUBLANES * LANES
    rem = n % tile_elems
    if rem:
        pad = tile_elems - rem
        x = jnp.pad(x, (0, pad))
        t = jnp.pad(t, (0, pad))
    rows = x.shape[0] // LANES          # multiple of 8
    x2 = x.reshape(rows, LANES)
    t2 = t.reshape(rows, LANES)

    # ~4 MiB per input block in native dtype (8192 rows for f32, 16384 bf16).
    itemsize = jnp.dtype(x2.dtype).itemsize
    max_tile_rows = max(
        SUBLANES,
        (TARGET_BLOCK_BYTES // (LANES * itemsize)) // SUBLANES * SUBLANES)
    tile_rows = min(max_tile_rows, rows)
    num_blocks = pl.cdiv(rows, tile_rows)

    ncores = _num_tensorcores()
    if ncores > 1 and num_blocks % ncores != 0:
        # Shrink tile_rows so blocks divide evenly across cores (no clamped
        # duplicate block, balanced HBM traffic).
        desired = ncores * pl.cdiv(num_blocks, ncores)
        tr_new = pl.cdiv(rows, desired)
        tr_new = pl.cdiv(tr_new, SUBLANES) * SUBLANES
        nb_new = pl.cdiv(rows, tr_new)
        if nb_new % ncores == 0:
            tile_rows, num_blocks = tr_new, nb_new
        else:
            ncores = 1
    blocks_per_core = num_blocks // ncores if ncores > 1 else num_blocks

    has_tail = (num_blocks * tile_rows) > rows

    kernel = functools.partial(
        _dice_kernel,
        tile_rows=tile_rows,
        blocks_per_core=blocks_per_core,
        num_blocks=num_blocks,
        total_rows=rows,
        has_tail=has_tail,
    )

    def in_map(c, i):
        return (c * blocks_per_core + i, 0)

    inter_p, sum_p = pl.pallas_call(
        kernel,
        out_shape=(
            jax.ShapeDtypeStruct((ncores * SUBLANES, LANES), jnp.float32),
            jax.ShapeDtypeStruct((ncores * SUBLANES, LANES), jnp.float32),
        ),
        grid_spec=pltpu.PrefetchScalarGridSpec(
            num_scalar_prefetch=0,
            grid=(ncores, blocks_per_core),
            in_specs=[
                pl.BlockSpec((tile_rows, LANES), in_map),
                pl.BlockSpec((tile_rows, LANES), in_map),
            ],
            out_specs=[
                pl.BlockSpec((SUBLANES, LANES), lambda c, i: (c, 0)),
                pl.BlockSpec((SUBLANES, LANES), lambda c, i: (c, 0)),
            ],
        ),
        compiler_params=pltpu.CompilerParams(
            dimension_semantics=("parallel", "arbitrary"),
            vmem_limit_bytes=VMEM_LIMIT_BYTES,
        ),
    )(x2, t2)

    intersection = jnp.sum(inter_p)
    total = jnp.sum(sum_p)               # == sum(x) + sum(t)
    smooth = jnp.float32(smooth)
    dice = (2.0 * intersection + smooth) / (total + smooth)
    return jnp.float32(1.0) - dice


def dice_loss_ref(inputs, targets, smooth=1.0):
    x = jnp.reshape(inputs, (-1,)).astype(jnp.float32)
    t = jnp.reshape(targets, (-1,)).astype(jnp.float32)
    inter = jnp.sum(x * t)
    dice = (2.0 * inter + smooth) / (jnp.sum(x) + jnp.sum(t) + smooth)
    return 1.0 - dice


if __name__ == "__main__":
    key = jax.random.PRNGKey(0)
    k1, k2 = jax.random.split(key)

    # Shapes consistent with a segmentation head output: (N, C, H, W)
    shape = (2, 4, 16, 16)
    inputs = jax.nn.sigmoid(jax.random.normal(k1, shape, dtype=jnp.float32))
    targets = (jax.random.uniform(k2, shape) > 0.5).astype(jnp.float32)

    loss = dice_loss(inputs, targets, smooth=1.0)
    loss = jax.block_until_ready(loss)

    ref = dice_loss_ref(inputs, targets, smooth=1.0)
    assert jnp.allclose(loss, ref, atol=1e-5, rtol=1e-5), (loss, ref)

    print("KERNEL_OK")
</pallas_src>

<mosaic_0001>
module attributes {stable_mosaic.version = 11 : i64} {
  func.func @_dice_kernel(%arg0: i32, %arg1: i32, %arg2: memref<16x128xf32, #tpu.memory_space<vmem>>, %arg3: memref<16x128xf32, #tpu.memory_space<vmem>>, %arg4: memref<8x128xf32, #tpu.memory_space<vmem>>, %arg5: memref<8x128xf32, #tpu.memory_space<vmem>>) attributes {dimension_semantics = [#tpu.dimension_semantics<parallel>, #tpu.dimension_semantics<arbitrary>], iteration_bounds = array<i64: 1, 1>, scalar_prefetch = 0 : i64, scratch_operands = 0 : i64, tpu.core_type = #tpu.core_type<tc>, window_params = [{transform_indices = @transform_0, window_bounds = array<i64: 16, 128>}, {transform_indices = @transform_1, window_bounds = array<i64: 16, 128>}, {transform_indices = @transform_2, window_bounds = array<i64: 8, 128>}, {transform_indices = @transform_3, window_bounds = array<i64: 8, 128>}]} {
    %c0_i32 = arith.constant 0 : i32
    %0 = arith.cmpi eq, %arg1, %c0_i32 : i32
    %1 = arith.extui %0 : i1 to i32
    %c0_i32_0 = arith.constant 0 : i32
    %2 = arith.cmpi ne, %1, %c0_i32_0 : i32
    scf.if %2 {
      %cst_13 = arith.constant 0.000000e+00 : f32
      %17 = vector.broadcast %cst_13 : f32 to vector<8x128xf32>
      %c0_14 = arith.constant 0 : index
      %c0_15 = arith.constant 0 : index
      %18 = vector.load %arg4[%c0_14, %c0_15] : memref<8x128xf32, #tpu.memory_space<vmem>>, vector<8x128xf32>
      tpu.vector_store %arg4[%c0_14, %c0_15], %17 {strides = array<i32>} : memref<8x128xf32, #tpu.memory_space<vmem>>, vector<8x128xf32>,
      %cst_16 = arith.constant 0.000000e+00 : f32
      %19 = vector.broadcast %cst_16 : f32 to vector<8x128xf32>
      %c0_17 = arith.constant 0 : index
      %c0_18 = arith.constant 0 : index
      %20 = vector.load %arg5[%c0_17, %c0_18] : memref<8x128xf32, #tpu.memory_space<vmem>>, vector<8x128xf32>
      tpu.vector_store %arg5[%c0_17, %c0_18], %19 {strides = array<i32>} : memref<8x128xf32, #tpu.memory_space<vmem>>, vector<8x128xf32>,
    } else {
    }
    %c0 = arith.constant 0 : index
    %c0_1 = arith.constant 0 : index
    %3 = vector.load %arg2[%c0, %c0_1] : memref<16x128xf32, #tpu.memory_space<vmem>>, vector<16x128xf32>
    %c0_2 = arith.constant 0 : index
    %c0_3 = arith.constant 0 : index
    %4 = vector.load %arg3[%c0_2, %c0_3] : memref<16x128xf32, #tpu.memory_space<vmem>>, vector<16x128xf32>
    %5 = vector.shape_cast %3 : vector<16x128xf32> to vector<2x8x128xf32>
    %6 = vector.shape_cast %4 : vector<16x128xf32> to vector<2x8x128xf32>
    %c0_4 = arith.constant 0 : index
    %c0_5 = arith.constant 0 : index
    %7 = vector.load %arg4[%c0_4, %c0_5] : memref<8x128xf32, #tpu.memory_space<vmem>>, vector<8x128xf32>
    %8 = arith.mulf %5, %6 : vector<2x8x128xf32>
    %cst = arith.constant dense<0.000000e+00> : vector<8x128xf32>
    %9 = vector.multi_reduction <add>, %8, %cst [0] : vector<2x8x128xf32> to vector<8x128xf32>
    %10 = arith.addf %7, %9 : vector<8x128xf32>
    %c0_6 = arith.constant 0 : index
    %c0_7 = arith.constant 0 : index
    %11 = vector.load %arg4[%c0_6, %c0_7] : memref<8x128xf32, #tpu.memory_space<vmem>>, vector<8x128xf32>
    tpu.vector_store %arg4[%c0_6, %c0_7], %10 {strides = array<i32>} : memref<8x128xf32, #tpu.memory_space<vmem>>, vector<8x128xf32>,
    %c0_8 = arith.constant 0 : index
    %c0_9 = arith.constant 0 : index
    %12 = vector.load %arg5[%c0_8, %c0_9] : memref<8x128xf32, #tpu.memory_space<vmem>>, vector<8x128xf32>
    %13 = arith.addf %5, %6 : vector<2x8x128xf32>
    %cst_10 = arith.constant dense<0.000000e+00> : vector<8x128xf32>
    %14 = vector.multi_reduction <add>, %13, %cst_10 [0] : vector<2x8x128xf32> to vector<8x128xf32>
    %15 = arith.addf %12, %14 : vector<8x128xf32>
    %c0_11 = arith.constant 0 : index
    %c0_12 = arith.constant 0 : index
    %16 = vector.load %arg5[%c0_11, %c0_12] : memref<8x128xf32, #tpu.memory_space<vmem>>, vector<8x128xf32>
    tpu.vector_store %arg5[%c0_11, %c0_12], %15 {strides = array<i32>} : memref<8x128xf32, #tpu.memory_space<vmem>>, vector<8x128xf32>,
    return
  }
  func.func @transform_0(%arg0: i32, %arg1: i32) -> (i32, i32) {
    %c1_i32 = arith.constant 1 : i32
    %0 = arith.muli %arg0, %c1_i32 : i32
    %1 = arith.addi %0, %arg1 : i32
    %c0_i32 = arith.constant 0 : i32
    %c0_i32_0 = arith.constant 0 : i32
    return %1, %c0_i32 : i32, i32
  }
  func.func @transform_1(%arg0: i32, %arg1: i32) -> (i32, i32) {
    %c1_i32 = arith.constant 1 : i32
    %0 = arith.muli %arg0, %c1_i32 : i32
    %1 = arith.addi %0, %arg1 : i32
    %c0_i32 = arith.constant 0 : i32
    %c0_i32_0 = arith.constant 0 : i32
    return %1, %c0_i32 : i32, i32
  }
  func.func @transform_2(%arg0: i32, %arg1: i32) -> (i32, i32) {
    %c0_i32 = arith.constant 0 : i32
    %c0_i32_0 = arith.constant 0 : i32
    return %arg0, %c0_i32 : i32, i32
  }
  func.func @transform_3(%arg0: i32, %arg1: i32) -> (i32, i32) {
    %c0_i32 = arith.constant 0 : i32
    %c0_i32_0 = arith.constant 0 : i32
    return %arg0, %c0_i32 : i32, i32
  }
}

</mosaic_0001>

<bundles_post_ra>
// kernel: tpu_custom_call.1
= control target key start
LH: loop header
LB: loop body
LE: loop exit
PB: predicated region body
PF: predicated region fallthrough
CT: control target
= control target key end

     0   :  { %9 = vsyncpa [#allocation3], 0  ;;  %s240_s0 = inlined_call_operand.hbm [shape: f32[16,128], index: 0, kind: input, shape index: {}]   ;;  %s241_s1 = inlined_call_operand.hbm [shape: f32[16,128], index: 1, kind: input, shape index: {}]   ;;  %s242_s2 = inlined_call_operand.hbm [shape: f32[8,128], index: 2, kind: output, shape index: {0}]   ;;  %s243_s3 = inlined_call_operand.hbm [shape: f32[8,128], index: 3, kind: output, shape index: {1}]  }
   0x1   :  { %10 = vsyncpa [#allocation6], 0 }
   0x2   :  { %11 = vsyncpa [#allocation4], 0 }
   0x3   :  { %12 = vsyncpa [#allocation9], 0  ;;  %s202_s12 = smov [#allocation2]  }
   0x4   :  { %s22_s13 = sshll.u32 %s202_s12, 4  ;;  %s23_s13 = int_to_ptr.vmem [resolvable:$true] %s22_s13 }
   0x5   :  { %s122_s14 = scalar_lea.vmem %s23_s13, 256  ;;  %p127_p1 = scmp.lt.s32.totalorder %s23_s13, %s23_s13 }
   0x6   :  { %p123_p0 = scmp.ne.s32.totalorder %s23_s13, %s122_s14  ;;  %p128_p2 = scmp.lt.s32.totalorder %s122_s14, %s122_s14 }
   0x8   :  { %p129_p3 = por %p128_p2, %p127_p1 }
   0xa   :  { %p130_p4 = pnand %p129_p3, %p123_p0 }
   0xc   :  { %133 = shalt.err (!%p130_p4)
}
   0xd   :  { %s203_s15 = smov 128   ;;  %s204_s16 = smov 8  }
   0xe   :  { %28 = dma.hbm_to_vmem [thread:$0]  %s240_s0, 256, %s23_s13, [#allocation3], %s203_s15, %s203_s15, %s204_s16  }
   0xf   :  { %s205_s19 = smov [#allocation5]  }
  0x10   :  { %s38_s20 = sshll.u32 %s205_s19, 4  ;;  %s39_s20 = int_to_ptr.vmem [resolvable:$true] %s38_s20 }
  0x11   :  { %s142_s21 = scalar_lea.vmem %s39_s20, 256  ;;  %p147_p6 = scmp.lt.s32.totalorder %s39_s20, %s39_s20 }
  0x12   :  { %p143_p5 = scmp.ne.s32.totalorder %s39_s20, %s142_s21  ;;  %p148_p7 = scmp.lt.s32.totalorder %s142_s21, %s142_s21 }
  0x14   :  { %p149_p8 = por %p148_p7, %p147_p6 }
  0x16   :  { %p150_p9 = pnand %p149_p8, %p143_p5 }
  0x18   :  { %153 = shalt.err (!%p150_p9)
}
  0x19   :  { %44 = dma.hbm_to_vmem [thread:$0]  %s241_s1, 256, %s39_s20, [#allocation6], %s203_s15, %s203_s15, %s204_s16  }
  0x1a   :  { %194 = dma.done.wait [#allocation3], 256  }
  0x1b   :  { %195 = vsyncadd [#allocation3], 4294967040 }
  0x1c   :  { %196 = dma.done.wait [#allocation6], 256  }
  0x1d   :  { %197 = vsyncadd [#allocation6], 4294967040  ;;  %v61_v0 = vld [vmem:[#allocation2] sm:$0xff]  ;;  %v62_v1 = vld [vmem:[#allocation2 + $0x8] sm:$0xff]  ;;  %s206_s0 = smov [#allocation7]   ;;  %s207_s25 = smov [#allocation8]  }
  0x1e   :  { %v63_v2 = vld [vmem:[#allocation5] sm:$0xff]  ;;  %v64_v3 = vld [vmem:[#allocation5 + $0x8] sm:$0xff]  ;;  %s83_s24 = sshll.u32 %s206_s0, 4  ;;  %s93_s26 = sshll.u32 %s207_s25, 4  ;;  %s84_s24 = int_to_ptr.vmem [resolvable:$true] %s83_s24  ;;  %s94_s26 = int_to_ptr.vmem [resolvable:$true] %s93_s26 }
  0x1f   :  { %v66_v4 = vmul.f32 %v63_v2, %v61_v0  ;;  %v72_v5 = vadd.f32 %v63_v2, %v61_v0  ;;  %v67_v6 = vmul.f32 %v64_v3, %v62_v1  ;;  %v73_v7 = vadd.f32 %v64_v3, %v62_v1  ;;  %s154_s1 = scalar_lea.vmem %s84_s24, 128  ;;  %p159_p11 = scmp.lt.s32.totalorder %s84_s24, %s84_s24 }
  0x20   :  { %p155_p10 = scmp.ne.s32.totalorder %s84_s24, %s154_s1  ;;  %p160_p12 = scmp.lt.s32.totalorder %s154_s1, %s154_s1 }
  0x21   :  { %v68_v8 = vadd.f32 %v67_v6, %v66_v4  ;;  %v74_v9 = vadd.f32 %v73_v7, %v72_v5 }
  0x22   :  { %p161_p13 = por %p160_p12, %p159_p11 }
  0x23   :  { %70 = vst [vmem:[#allocation7] sm:$0xff] %v68_v8  ;;  %76 = vst [vmem:[#allocation8] sm:$0xff] %v74_v9 }
  0x24   :  { %p162_p0 = pnand %p161_p13, %p155_p10 }
  0x26   :  { %165 = shalt.err (!%p162_p0)
}
  0x27   :  { %86 = dma.vmem_to_hbm [thread:$0]  %s84_s24, 128, %s242_s2, [#allocation4]  }
  0x28   :  { %s174_s29 = scalar_lea.vmem %s94_s26, 128  ;;  %p179_p2 = scmp.lt.s32.totalorder %s94_s26, %s94_s26 }
  0x29   :  { %p175_p1 = scmp.ne.s32.totalorder %s94_s26, %s174_s29  ;;  %p180_p3 = scmp.lt.s32.totalorder %s174_s29, %s174_s29 }
  0x2b   :  { %p181_p4 = por %p180_p3, %p179_p2 }
  0x2d   :  { %p182_p5 = pnand %p181_p4, %p175_p1 }
  0x2f   :  { %185 = shalt.err (!%p182_p5)
}
  0x30   :  { %96 = dma.vmem_to_hbm [thread:$0]  %s94_s26, 128, %s243_s3, [#allocation9]  }
  0x31   :  { %198 = dma.done.wait [#allocation4], 128  }
  0x32   :  { %199 = vsyncadd [#allocation4], 4294967168 }
  0x33   :  { %200 = dma.done.wait [#allocation9], 128  }
  0x34   :  { %201 = vsyncadd [#allocation9], 4294967168 }
  0x35   :  { %103 = vsyncpa [#allocation3], 1 }
  0x36   :  { %104 = vsyncpa [#allocation6], 1 }
  0x37   :  { %105 = vsyncpa [#allocation4], 1 }
  0x38   :  { %106 = vsyncpa [#allocation9], 1 }

</bundles_post_ra>
